<compile_context>
chip_gen: v6e
topology: v6e:2x2x1
jax: 0.10.0
libtpu: 0.0.40
codegen_flags: <defaults>
</compile_context>

<pallas_src>
import functools

import jax
import jax.numpy as jnp
from jax.experimental import pallas as pl
from jax.experimental.pallas import tpu as pltpu

_MB = 1 << 20


def _round_up(x, m):
    return (x + m - 1) // m * m


def _vmem_capacity_bytes():
    """Physical VMEM per core; conservative 64 MiB (v7x) fallback."""
    try:
        info = pltpu.get_tpu_info()
        cap = getattr(info, "vmem_capacity_bytes", None)
        if cap:
            return int(cap)
    except Exception:
        pass
    return 64 * _MB


def _spec(shape, index_map, *, resident=False):
    """BlockSpec; single-buffer blocks whose index never changes over the grid."""
    if resident:
        try:
            return pl.BlockSpec(shape, index_map, pipeline_mode=pl.Buffered(1))
        except Exception:  # older API without pipeline_mode — fall back silently
            pass
    return pl.BlockSpec(shape, index_map)


def _supcon_kernel(lab_a_ref, lab_c_ref, bias_ref, anchor_ref, contrast_ref,
                   loss_ref, m_sc, l_sc, pd_sc, pc_sc, *,
                   inv_temperature, loss_scale, a_real, tile_a, tile_n,
                   pair_mode):
    """SupCon loss for one (anchor tile, contrast tile) grid step.

    lab_a_ref    : [TA, 1]    int32  anchor labels (padded rows = sentinel)
    lab_c_ref    : [1, TN]    int32  contrast labels (padded cols = sentinel)
    bias_ref     : [1, TN]    f32    0 on real cols, -1e30 on padded cols
    anchor_ref   : [TA, Dp]   f32/bf16
    contrast_ref : [Dp, TN]   f32/bf16 (pre-transposed, MXU-native layout)
    loss_ref     : [TA, 1]    f32    per-anchor loss (0 on padded rows)
    m/l/pd/pc_sc : [TA, 1]    f32    online-LSE accumulators across N tiles
    """
    i = pl.program_id(0)          # anchor tile   ("parallel")
    kj = pl.program_id(1)         # contrast tile ("arbitrary": online LSE)
    nk = pl.num_programs(1)

    @pl.when(kj == 0)
    def _init():
        m_sc[...] = jnp.full(m_sc.shape, -jnp.inf, dtype=jnp.float32)
        l_sc[...] = jnp.zeros(l_sc.shape, dtype=jnp.float32)
        pd_sc[...] = jnp.zeros(pd_sc.shape, dtype=jnp.float32)
        pc_sc[...] = jnp.zeros(pc_sc.shape, dtype=jnp.float32)

    a = anchor_ref[...]                        # [TA, Dp]
    c = contrast_ref[...]                      # [Dp, TN]
    prescale = a.dtype == jnp.bfloat16
    if prescale:
        # fold 1/T into the small [TA, D] operand instead of the [TA, N] logits
        a = a * inv_temperature
    logits = jnp.dot(a, c, preferred_element_type=jnp.float32)  # [TA, TN] f32
    if not prescale:
        logits = logits * inv_temperature
    logits = logits + bias_ref[...]            # -1e30 knocks out padded columns

    ta, tn = logits.shape
    row_ids = jax.lax.broadcasted_iota(jnp.int32, (ta, 1), 0) + i * tile_a
    col_ids = jax.lax.broadcasted_iota(jnp.int32, (ta, tn), 1) + kj * tile_n
    not_self = col_ids != row_ids              # [TA, TN] bool (broadcast compare)

    # Positives mask rebuilt from labels in-register (never touches HBM);
    # sentinel-padded labels never match, so padding is excluded for free.
    lab_a = lab_a_ref[...]                     # [TA, 1] int32
    lab_c = lab_c_ref[...]                     # [1, TN] int32
    pos = (lab_a == lab_c) & not_self
    if pair_mode == 1:
        pos = pos & (lab_a != 0) & (lab_c != 0)
    elif pair_mode == 2:
        pos = pos & (lab_a != 1) & (lab_c != 1)

    # Online log-sum-exp over non-self columns.  The running max includes the
    # self column (matching the PyTorch reference's logits_max); padded
    # columns sit at -1e30 so they never influence it.
    m_prev = m_sc[...]
    m_new = jnp.maximum(m_prev, jnp.max(logits, axis=1, keepdims=True))
    alpha = jnp.exp(m_prev - m_new)
    p = jnp.where(not_self, jnp.exp(logits - m_new), 0.0)
    l_sc[...] = alpha * l_sc[...] + jnp.sum(p, axis=1, keepdims=True)
    m_sc[...] = m_new

    # Fused positives statistics (log_prob [TA, TN] is never built):
    #   sum_j pos_j*(logits_j - log_denom) = pos_dot - pos_cnt*log_denom
    pd_sc[...] += jnp.sum(jnp.where(pos, logits, 0.0), axis=1, keepdims=True)
    pc_sc[...] += jnp.sum(jnp.where(pos, 1.0, 0.0), axis=1, keepdims=True)

    @pl.when(kj == nk - 1)
    def _finalize():
        log_denom = m_sc[...] + jnp.log(l_sc[...])
        pc = pc_sc[...]
        mean_log_prob_pos = (pd_sc[...] - pc * log_denom) / (pc + 1e-10)
        row_valid = row_ids < a_real
        loss_ref[...] = jnp.where(row_valid,
                                  (-loss_scale) * mean_log_prob_pos, 0.0)


def _supcon_ref(features, labels=None, mask=None, *, temperature=0.07,
                contrast_mode='one', base_temperature=0.07, pair_mode=0):
    """Pure-JAX reference mirroring the PyTorch SupConLoss.forward."""
    bsz, n_views = features.shape[0], features.shape[1]
    features = features.reshape(bsz, n_views, -1).astype(jnp.float32)
    if labels is None and mask is None:
        base_mask = jnp.eye(bsz, dtype=jnp.float32)
    elif labels is not None:
        labels = jnp.asarray(labels).reshape(-1, 1)
        base_mask = (labels == labels.T).astype(jnp.float32)
        if pair_mode == 1:
            keep = (labels[:, 0] != 0).astype(jnp.float32)
            base_mask = base_mask * keep[:, None] * keep[None, :]
        elif pair_mode == 2:
            keep = (labels[:, 0] != 1).astype(jnp.float32)
            base_mask = base_mask * keep[:, None] * keep[None, :]
    else:
        base_mask = mask.astype(jnp.float32)
    contrast_feature = features.transpose(1, 0, 2).reshape(bsz * n_views, -1)
    if contrast_mode == 'one':
        anchor_feature, anchor_count = features[:, 0], 1
    else:
        anchor_feature, anchor_count = contrast_feature, n_views
    logits = anchor_feature @ contrast_feature.T / temperature
    logits = logits - jnp.max(logits, axis=1, keepdims=True)
    m = jnp.tile(base_mask, (anchor_count, n_views))
    A, N = m.shape
    lmask = (jax.lax.broadcasted_iota(jnp.int32, (A, N), 1)
             != jax.lax.broadcasted_iota(jnp.int32, (A, N), 0)).astype(jnp.float32)
    m = m * lmask
    exp_logits = jnp.exp(logits) * lmask
    log_prob = logits - jnp.log(exp_logits.sum(1, keepdims=True))
    mean_log_prob_pos = (m * log_prob).sum(1) / (m.sum(1) + 1e-10)
    return (-(temperature / base_temperature) * mean_log_prob_pos).mean()


def supcon_loss(features, labels=None, bag_label=None, mask=None, *,
                temperature=0.07, contrast_mode='one', base_temperature=0.07,
                pair_mode=0, mask_uncertain_neg=False,
                use_bf16_matmul=True, tile_a=None, tile_n=None):
    """JAX/Pallas equivalent of SupConLoss.forward (mask_uncertain_neg=False)."""
    if features.ndim < 3:
        raise ValueError('`features` needs to be [bsz, n_views, ...]')
    if mask_uncertain_neg:
        # TODO(synk): mask_uncertain_neg=True (bag_label-based column masking) not implemented.
        raise NotImplementedError('mask_uncertain_neg=True not supported')
    if labels is not None and mask is not None:
        raise ValueError('Cannot define both `labels` and `mask`')

    bsz, n_views = features.shape[0], features.shape[1]
    features = features.reshape(bsz, n_views, -1).astype(jnp.float32)
    D = features.shape[-1]

    if mask is not None:
        # TODO(synk): explicit (possibly asymmetric) `mask` input not lowered to Pallas;
        # it falls back to the pure-JAX path.
        return _supcon_ref(features, mask=mask, temperature=temperature,
                           contrast_mode=contrast_mode,
                           base_temperature=base_temperature)

    if labels is None:
        lab = jnp.arange(bsz, dtype=jnp.int32)     # eye mask == equality on arange
        eff_pair_mode = 0
    else:
        lab = jnp.asarray(labels).reshape(-1).astype(jnp.int32)
        if lab.shape[0] != bsz:
            raise ValueError('Num of labels does not match num of features')
        eff_pair_mode = int(pair_mode)

    contrast_count = n_views
    # cat(unbind(features, dim=1)) == view-major stacking; no per-view concat.
    contrast_feature = features.transpose(1, 0, 2).reshape(bsz * n_views, D)
    lab_c = jnp.tile(lab, contrast_count)          # [N]

    if contrast_mode == 'one':
        anchor_feature = features[:, 0, :]
        anchor_count = 1
        lab_a = lab
    elif contrast_mode == 'all':
        anchor_feature = contrast_feature
        anchor_count = contrast_count
        lab_a = lab_c
    else:
        raise ValueError(f'Unknown mode: {contrast_mode}')

    A = bsz * anchor_count
    N = bsz * contrast_count

    feat_dtype = jnp.bfloat16 if use_bf16_matmul else jnp.float32
    feat_bytes = jnp.dtype(feat_dtype).itemsize
    D_pad = _round_up(D, 128)

    # ---------------- generation-aware tile / VMEM planning -----------------
    cap = _vmem_capacity_bytes()
    big_vmem = cap >= 96 * _MB                 # v5e / v6e: 128 MiB per core
    vmem_limit = 100 * _MB if big_vmem else 40 * _MB   # v7x: stay well under 64 MiB
    plan_budget = vmem_limit - 8 * _MB         # headroom for Mosaic internal scratch

    def kernel_vmem(ta, tn):
        b = 2 * D_pad * tn * feat_bytes        # contrast tiles (<=2 buffers)
        b += 2 * ta * D_pad * feat_bytes       # anchor tiles
        b += 4 * ta * tn * 4                   # live [ta, tn] f32 intermediates
        b += 2 * (ta + 2 * tn) * 4             # label / bias rows
        b += 6 * ta * 4                        # accumulator scratch + output
        return b

    if tile_a is None:
        TA = min(512 if big_vmem else 256, _round_up(A, 8))
        if not big_vmem:
            # v7x: 2 TensorCores shard the "parallel" axis -> prefer >=2 anchor tiles.
            while TA > 128 and _round_up(A, TA) // TA < 2:
                TA //= 2
    else:
        TA = min(_round_up(int(tile_a), 8), _round_up(A, 8))
    A_pad = _round_up(A, TA)

    N_pad128 = _round_up(N, 128)
    if tile_n is not None:
        TN = min(_round_up(int(tile_n), 128), N_pad128)
    elif kernel_vmem(TA, N_pad128) <= plan_budget:
        TN = N_pad128                          # whole contrast stays VMEM-resident
    else:
        TN = 128                               # stream contrast with online LSE
        for cand in (4096, 2048, 1024, 512, 256):
            if cand < N_pad128 and kernel_vmem(TA, cand) <= plan_budget:
                TN = cand
                break
    N_pad = _round_up(N, TN)
    a_tiles = A_pad // TA
    n_tiles = N_pad // TN

    # ------------------------- operand preparation --------------------------
    anchor = jnp.zeros((A_pad, D_pad), feat_dtype).at[:A, :D].set(
        anchor_feature.astype(feat_dtype))
    # One-time XLA transpose so the kernel contracts an MXU-native [K, N]
    # (lane-dense N) RHS instead of re-laying out the big operand every step.
    contrast_t = jnp.zeros((D_pad, N_pad), feat_dtype).at[:D, :N].set(
        contrast_feature.T.astype(feat_dtype))

    # Sentinel-padded labels never equal a real label; the additive bias row
    # removes padded columns from the softmax denominator (no per-element
    # `col < N` compare in the kernel).
    lab_min = jnp.min(lab)
    lab_a_p = jnp.full((A_pad, 1), lab_min - 2, jnp.int32).at[:A, 0].set(lab_a)
    lab_c_p = jnp.full((1, N_pad), lab_min - 1, jnp.int32).at[0, :N].set(lab_c)
    col_bias = jnp.where(jnp.arange(N_pad) < N, 0.0, -1e30
                         ).astype(jnp.float32).reshape(1, N_pad)

    kernel = functools.partial(
        _supcon_kernel,
        inv_temperature=float(1.0 / temperature),
        loss_scale=float(temperature / base_temperature),
        a_real=A, tile_a=TA, tile_n=TN, pair_mode=eff_pair_mode)

    anchor_res = a_tiles == 1      # block index constant over the whole grid
    contrast_res = n_tiles == 1

    per_anchor = pl.pallas_call(
        kernel,
        out_shape=jax.ShapeDtypeStruct((A_pad, 1), jnp.float32),
        grid_spec=pltpu.PrefetchScalarGridSpec(
            num_scalar_prefetch=0,
            grid=(a_tiles, n_tiles),
            in_specs=[
                _spec((TA, 1), lambda i, k: (i, 0), resident=anchor_res),      # anchor labels
                _spec((1, TN), lambda i, k: (0, k), resident=contrast_res),    # contrast labels
                _spec((1, TN), lambda i, k: (0, k), resident=contrast_res),    # padding bias row
                _spec((TA, D_pad), lambda i, k: (i, 0), resident=anchor_res),  # anchor tile
                _spec((D_pad, TN), lambda i, k: (0, k), resident=contrast_res),# contrast tile
            ],
            out_specs=pl.BlockSpec((TA, 1), lambda i, k: (i, 0)),
            scratch_shapes=[pltpu.VMEM((TA, 1), jnp.float32)] * 4,
        ),
        compiler_params=pltpu.CompilerParams(
            dimension_semantics=("parallel", "arbitrary"),
            vmem_limit_bytes=int(vmem_limit)),
    )(lab_a_p, lab_c_p, col_bias, anchor, contrast_t)

    # Padded rows are zeroed inside the kernel; mean over the true A anchors.
    return jnp.sum(per_anchor) / A


if __name__ == "__main__":
    key = jax.random.PRNGKey(0)
    k_feat, k_lbl, k_feat2, k_lbl2 = jax.random.split(key, 4)

    bsz, n_views, dim = 8, 2, 32
    features = jax.random.normal(k_feat, (bsz, n_views, dim), dtype=jnp.float32)
    features = features / jnp.linalg.norm(features, axis=-1, keepdims=True)
    labels = jax.random.randint(k_lbl, (bsz,), 0, 2, dtype=jnp.int32)

    # f32 validation path (tight check), both contrast modes (resident contrast).
    for mode in ("one", "all"):
        out = jax.block_until_ready(
            supcon_loss(features, labels=labels, contrast_mode=mode,
                        use_bf16_matmul=False))
        ref = _supcon_ref(features, labels=labels, contrast_mode=mode)
        assert jnp.isfinite(out), (mode, out)
        assert jnp.allclose(out, ref, rtol=1e-4, atol=1e-4), (mode, out, ref)

    # pair_mode filtering.
    out = jax.block_until_ready(
        supcon_loss(features, labels=labels, contrast_mode="all",
                    pair_mode=1, use_bf16_matmul=False))
    ref = _supcon_ref(features, labels=labels, contrast_mode="all", pair_mode=1)
    assert jnp.allclose(out, ref, rtol=1e-4, atol=1e-4), (out, ref)

    # SimCLR (labels=None, eye mask) path.
    out = jax.block_until_ready(
        supcon_loss(features, contrast_mode="all", use_bf16_matmul=False))
    ref = _supcon_ref(features, contrast_mode="all")
    assert jnp.allclose(out, ref, rtol=1e-4, atol=1e-4), (out, ref)

    # Streamed-contrast path: force N-axis tiling (online log-sum-exp) with
    # padding on both the anchor and contrast axes.
    bsz2 = 72
    feats2 = jax.random.normal(k_feat2, (bsz2, n_views, dim), dtype=jnp.float32)
    feats2 = feats2 / jnp.linalg.norm(feats2, axis=-1, keepdims=True)
    labels2 = jax.random.randint(k_lbl2, (bsz2,), 0, 2, dtype=jnp.int32)
    out = jax.block_until_ready(
        supcon_loss(feats2, labels=labels2, contrast_mode="all",
                    use_bf16_matmul=False, tile_a=64, tile_n=128))
    ref = _supcon_ref(feats2, labels=labels2, contrast_mode="all")
    assert jnp.allclose(out, ref, rtol=1e-4, atol=1e-4), (out, ref)

    # bf16 fast path (default) — loose check vs the f32 reference.
    out_bf16 = jax.block_until_ready(
        supcon_loss(features, labels=labels, contrast_mode="all"))
    ref = _supcon_ref(features, labels=labels, contrast_mode="all")
    assert jnp.isfinite(out_bf16), out_bf16
    assert jnp.allclose(out_bf16, ref, rtol=5e-2, atol=5e-2), (out_bf16, ref)

    print("KERNEL_OK")
</pallas_src>

<mosaic_0001>
module attributes {stable_mosaic.version = 11 : i64} {
  func.func @_supcon_kernel(%arg0: i32, %arg1: i32, %arg2: memref<8x1xi32, #tpu.memory_space<vmem>>, %arg3: memref<1x128xi32, #tpu.memory_space<vmem>>, %arg4: memref<1x128xf32, #tpu.memory_space<vmem>>, %arg5: memref<8x128xf32, #tpu.memory_space<vmem>>, %arg6: memref<128x128xf32, #tpu.memory_space<vmem>>, %arg7: memref<8x1xf32, #tpu.memory_space<vmem>>, %arg8: memref<8x1xf32, #tpu.memory_space<vmem>>, %arg9: memref<8x1xf32, #tpu.memory_space<vmem>>, %arg10: memref<8x1xf32, #tpu.memory_space<vmem>>, %arg11: memref<8x1xf32, #tpu.memory_space<vmem>>) attributes {dimension_semantics = [#tpu.dimension_semantics<parallel>, #tpu.dimension_semantics<arbitrary>], iteration_bounds = array<i64: 1, 1>, scalar_prefetch = 0 : i64, scratch_operands = 4 : i64, tpu.core_type = #tpu.core_type<tc>, window_params = [{pipeline_mode = #tpu.pipeline_mode<synchronous>, transform_indices = @transform_0, window_bounds = array<i64: 8, 1>}, {pipeline_mode = #tpu.pipeline_mode<synchronous>, transform_indices = @transform_1, window_bounds = array<i64: 1, 128>}, {pipeline_mode = #tpu.pipeline_mode<synchronous>, transform_indices = @transform_2, window_bounds = array<i64: 1, 128>}, {pipeline_mode = #tpu.pipeline_mode<synchronous>, transform_indices = @transform_3, window_bounds = array<i64: 8, 128>}, {pipeline_mode = #tpu.pipeline_mode<synchronous>, transform_indices = @transform_4, window_bounds = array<i64: 128, 128>}, {transform_indices = @transform_5, window_bounds = array<i64: 8, 1>}]} {
    %c0_i32 = arith.constant 0 : i32
    %0 = arith.cmpi eq, %arg1, %c0_i32 : i32
    %1 = arith.extui %0 : i1 to i32
    %c0_i32_0 = arith.constant 0 : i32
    %2 = arith.cmpi ne, %1, %c0_i32_0 : i32
    scf.if %2 {
      %cst_37 = arith.constant 0xFF800000 : f32
      %63 = vector.broadcast %cst_37 : f32 to vector<8x1xf32>
      %c0_38 = arith.constant 0 : index
      %c0_39 = arith.constant 0 : index
      %64 = vector.load %arg8[%c0_38, %c0_39] : memref<8x1xf32, #tpu.memory_space<vmem>>, vector<8x1xf32>
      tpu.vector_store %arg8[%c0_38, %c0_39], %63 {strides = array<i32>} : memref<8x1xf32, #tpu.memory_space<vmem>>, vector<8x1xf32>,
      %cst_40 = arith.constant 0.000000e+00 : f32
      %65 = vector.broadcast %cst_40 : f32 to vector<8x1xf32>
      %c0_41 = arith.constant 0 : index
      %c0_42 = arith.constant 0 : index
      %66 = vector.load %arg9[%c0_41, %c0_42] : memref<8x1xf32, #tpu.memory_space<vmem>>, vector<8x1xf32>
      tpu.vector_store %arg9[%c0_41, %c0_42], %65 {strides = array<i32>} : memref<8x1xf32, #tpu.memory_space<vmem>>, vector<8x1xf32>,
      %cst_43 = arith.constant 0.000000e+00 : f32
      %67 = vector.broadcast %cst_43 : f32 to vector<8x1xf32>
      %c0_44 = arith.constant 0 : index
      %c0_45 = arith.constant 0 : index
      %68 = vector.load %arg10[%c0_44, %c0_45] : memref<8x1xf32, #tpu.memory_space<vmem>>, vector<8x1xf32>
      tpu.vector_store %arg10[%c0_44, %c0_45], %67 {strides = array<i32>} : memref<8x1xf32, #tpu.memory_space<vmem>>, vector<8x1xf32>,
      %cst_46 = arith.constant 0.000000e+00 : f32
      %69 = vector.broadcast %cst_46 : f32 to vector<8x1xf32>
      %c0_47 = arith.constant 0 : index
      %c0_48 = arith.constant 0 : index
      %70 = vector.load %arg11[%c0_47, %c0_48] : memref<8x1xf32, #tpu.memory_space<vmem>>, vector<8x1xf32>
      tpu.vector_store %arg11[%c0_47, %c0_48], %69 {strides = array<i32>} : memref<8x1xf32, #tpu.memory_space<vmem>>, vector<8x1xf32>,
    } else {
    }
    %c0 = arith.constant 0 : index
    %c0_1 = arith.constant 0 : index
    %3 = vector.load %arg5[%c0, %c0_1] : memref<8x128xf32, #tpu.memory_space<vmem>>, vector<8x128xf32>
    %c0_2 = arith.constant 0 : index
    %c0_3 = arith.constant 0 : index
    %4 = vector.load %arg6[%c0_2, %c0_3] : memref<128x128xf32, #tpu.memory_space<vmem>>, vector<128x128xf32>
    %cst = arith.constant dense<0.000000e+00> : vector<8x128xf32>
    %5 = tpu.matmul %3, %4, %cst {dimension_numbers = #tpu.dot_dimension_numbers<[1], [0], [0], [1], [0, 0, 1, 1], [], []>} : vector<8x128xf32>, vector<128x128xf32>, vector<8x128xf32> -> vector<8x128xf32>
    %cst_4 = arith.constant 14.2857141 : f32
    %6 = vector.broadcast %cst_4 : f32 to vector<8x128xf32>
    %7 = arith.mulf %5, %6 : vector<8x128xf32>
    %c0_5 = arith.constant 0 : index
    %c0_6 = arith.constant 0 : index
    %8 = vector.load %arg4[%c0_5, %c0_6] : memref<1x128xf32, #tpu.memory_space<vmem>>, vector<1x128xf32>
    %9 = vector.broadcast %8 : vector<1x128xf32> to vector<8x128xf32>
    %10 = arith.addf %7, %9 : vector<8x128xf32>
    %11 = tpu.iota {dimensions = array<i32: 0>} : vector<8x1xi32>
    %c8_i32 = arith.constant 8 : i32
    %12 = arith.muli %arg0, %c8_i32 : i32
    %13 = vector.broadcast %12 : i32 to vector<8x1xi32>
    %14 = arith.addi %11, %13 : vector<8x1xi32>
    %15 = tpu.iota {dimensions = array<i32: 1>} : vector<8x128xi32>
    %c128_i32 = arith.constant 128 : i32
    %16 = arith.muli %arg1, %c128_i32 : i32
    %17 = vector.broadcast %16 : i32 to vector<8x128xi32>
    %18 = arith.addi %15, %17 : vector<8x128xi32>
    %19 = vector.broadcast %14 : vector<8x1xi32> to vector<8x128xi32>
    %20 = arith.cmpi ne, %18, %19 : vector<8x128xi32>
    %c0_7 = arith.constant 0 : index
    %c0_8 = arith.constant 0 : index
    %21 = vector.load %arg2[%c0_7, %c0_8] : memref<8x1xi32, #tpu.memory_space<vmem>>, vector<8x1xi32>
    %c0_9 = arith.constant 0 : index
    %c0_10 = arith.constant 0 : index
    %22 = vector.load %arg3[%c0_9, %c0_10] : memref<1x128xi32, #tpu.memory_space<vmem>>, vector<1x128xi32>
    %23 = vector.broadcast %21 : vector<8x1xi32> to vector<8x128xi32>
    %24 = vector.broadcast %22 : vector<1x128xi32> to vector<8x128xi32>
    %25 = arith.cmpi eq, %23, %24 : vector<8x128xi32>
    %26 = arith.andi %25, %20 : vector<8x128xi1>
    %c0_11 = arith.constant 0 : index
    %c0_12 = arith.constant 0 : index
    %27 = vector.load %arg8[%c0_11, %c0_12] : memref<8x1xf32, #tpu.memory_space<vmem>>, vector<8x1xf32>
    %cst_13 = arith.constant dense<0xFF800000> : vector<8xf32>
    %28 = vector.multi_reduction <maximumf>, %10, %cst_13 [1] : vector<8x128xf32> to vector<8xf32>
    %29 = vector.shape_cast %28 : vector<8xf32> to vector<8x1xf32>
    %30 = arith.maximumf %27, %29 : vector<8x1xf32>
    %31 = arith.subf %27, %30 : vector<8x1xf32>
    %32 = math.exp %31 : vector<8x1xf32>
    %33 = vector.broadcast %30 : vector<8x1xf32> to vector<8x128xf32>
    %34 = arith.subf %10, %33 : vector<8x128xf32>
    %35 = math.exp %34 : vector<8x128xf32>
    %cst_14 = arith.constant 0.000000e+00 : f32
    %36 = vector.broadcast %cst_14 : f32 to vector<8x128xf32>
    %37 = arith.select %20, %35, %36 : vector<8x128xi1>, vector<8x128xf32>
    %c0_15 = arith.constant 0 : index
    %c0_16 = arith.constant 0 : index
    %38 = vector.load %arg9[%c0_15, %c0_16] : memref<8x1xf32, #tpu.memory_space<vmem>>, vector<8x1xf32>
    %39 = arith.mulf %32, %38 : vector<8x1xf32>
    %cst_17 = arith.constant dense<0.000000e+00> : vector<8xf32>
    %40 = vector.multi_reduction <add>, %37, %cst_17 [1] : vector<8x128xf32> to vector<8xf32>
    %41 = vector.shape_cast %40 : vector<8xf32> to vector<8x1xf32>
    %42 = arith.addf %39, %41 : vector<8x1xf32>
    %c0_18 = arith.constant 0 : index
    %c0_19 = arith.constant 0 : index
    %43 = vector.load %arg9[%c0_18, %c0_19] : memref<8x1xf32, #tpu.memory_space<vmem>>, vector<8x1xf32>
    tpu.vector_store %arg9[%c0_18, %c0_19], %42 {strides = array<i32>} : memref<8x1xf32, #tpu.memory_space<vmem>>, vector<8x1xf32>,
    %c0_20 = arith.constant 0 : index
    %c0_21 = arith.constant 0 : index
    %44 = vector.load %arg8[%c0_20, %c0_21] : memref<8x1xf32, #tpu.memory_space<vmem>>, vector<8x1xf32>
    tpu.vector_store %arg8[%c0_20, %c0_21], %30 {strides = array<i32>} : memref<8x1xf32, #tpu.memory_space<vmem>>, vector<8x1xf32>,
    %c0_22 = arith.constant 0 : index
    %c0_23 = arith.constant 0 : index
    %45 = vector.load %arg10[%c0_22, %c0_23] : memref<8x1xf32, #tpu.memory_space<vmem>>, vector<8x1xf32>
    %cst_24 = arith.constant 0.000000e+00 : f32
    %46 = vector.broadcast %cst_24 : f32 to vector<8x128xf32>
    %47 = arith.select %26, %10, %46 : vector<8x128xi1>, vector<8x128xf32>
    %cst_25 = arith.constant dense<0.000000e+00> : vector<8xf32>
    %48 = vector.multi_reduction <add>, %47, %cst_25 [1] : vector<8x128xf32> to vector<8xf32>
    %49 = vector.shape_cast %48 : vector<8xf32> to vector<8x1xf32>
    %50 = arith.addf %45, %49 : vector<8x1xf32>
    %c0_26 = arith.constant 0 : index
    %c0_27 = arith.constant 0 : index
    %51 = vector.load %arg10[%c0_26, %c0_27] : memref<8x1xf32, #tpu.memory_space<vmem>>, vector<8x1xf32>
    tpu.vector_store %arg10[%c0_26, %c0_27], %50 {strides = array<i32>} : memref<8x1xf32, #tpu.memory_space<vmem>>, vector<8x1xf32>,
    %c0_28 = arith.constant 0 : index
    %c0_29 = arith.constant 0 : index
    %52 = vector.load %arg11[%c0_28, %c0_29] : memref<8x1xf32, #tpu.memory_space<vmem>>, vector<8x1xf32>
    %cst_30 = arith.constant 1.000000e+00 : f32
    %cst_31 = arith.constant 0.000000e+00 : f32
    %53 = vector.broadcast %cst_30 : f32 to vector<8x128xf32>
    %54 = vector.broadcast %cst_31 : f32 to vector<8x128xf32>
    %55 = arith.select %26, %53, %54 : vector<8x128xi1>, vector<8x128xf32>
    %cst_32 = arith.constant dense<0.000000e+00> : vector<8xf32>
    %56 = vector.multi_reduction <add>, %55, %cst_32 [1] : vector<8x128xf32> to vector<8xf32>
    %57 = vector.shape_cast %56 : vector<8xf32> to vector<8x1xf32>
    %58 = arith.addf %52, %57 : vector<8x1xf32>
    %c0_33 = arith.constant 0 : index
    %c0_34 = arith.constant 0 : index
    %59 = vector.load %arg11[%c0_33, %c0_34] : memref<8x1xf32, #tpu.memory_space<vmem>>, vector<8x1xf32>
    tpu.vector_store %arg11[%c0_33, %c0_34], %58 {strides = array<i32>} : memref<8x1xf32, #tpu.memory_space<vmem>>, vector<8x1xf32>,
    %c0_i32_35 = arith.constant 0 : i32
    %60 = arith.cmpi eq, %arg1, %c0_i32_35 : i32
    %61 = arith.extui %60 : i1 to i32
    %c0_i32_36 = arith.constant 0 : i32
    %62 = arith.cmpi ne, %61, %c0_i32_36 : i32
    scf.if %62 {
      %c0_37 = arith.constant 0 : index
      %c0_38 = arith.constant 0 : index
      %63 = vector.load %arg8[%c0_37, %c0_38] : memref<8x1xf32, #tpu.memory_space<vmem>>, vector<8x1xf32>
      %c0_39 = arith.constant 0 : index
      %c0_40 = arith.constant 0 : index
      %64 = vector.load %arg9[%c0_39, %c0_40] : memref<8x1xf32, #tpu.memory_space<vmem>>, vector<8x1xf32>
      %65 = math.log %64 : vector<8x1xf32>
      %66 = arith.addf %63, %65 : vector<8x1xf32>
      %c0_41 = arith.constant 0 : index
      %c0_42 = arith.constant 0 : index
      %67 = vector.load %arg11[%c0_41, %c0_42] : memref<8x1xf32, #tpu.memory_space<vmem>>, vector<8x1xf32>
      %c0_43 = arith.constant 0 : index
      %c0_44 = arith.constant 0 : index
      %68 = vector.load %arg10[%c0_43, %c0_44] : memref<8x1xf32, #tpu.memory_space<vmem>>, vector<8x1xf32>
      %69 = arith.mulf %67, %66 : vector<8x1xf32>
      %70 = arith.subf %68, %69 : vector<8x1xf32>
      %cst_45 = arith.constant 1.000000e-10 : f32
      %71 = vector.broadcast %cst_45 : f32 to vector<8x1xf32>
      %72 = arith.addf %67, %71 : vector<8x1xf32>
      %73 = arith.divf %70, %72 : vector<8x1xf32>
      %c8_i32_46 = arith.constant 8 : i32
      %74 = vector.broadcast %c8_i32_46 : i32 to vector<8x1xi32>
      %75 = arith.cmpi slt, %14, %74 : vector<8x1xi32>
      %cst_47 = arith.constant -1.000000e+00 : f32
      %76 = vector.broadcast %cst_47 : f32 to vector<8x1xf32>
      %77 = arith.mulf %76, %73 : vector<8x1xf32>
      %cst_48 = arith.constant 0.000000e+00 : f32
      %78 = vector.broadcast %cst_48 : f32 to vector<8x1xf32>
      %79 = arith.select %75, %77, %78 : vector<8x1xi1>, vector<8x1xf32>
      %c0_49 = arith.constant 0 : index
      %c0_50 = arith.constant 0 : index
      %80 = vector.load %arg7[%c0_49, %c0_50] : memref<8x1xf32, #tpu.memory_space<vmem>>, vector<8x1xf32>
      tpu.vector_store %arg7[%c0_49, %c0_50], %79 {strides = array<i32>} : memref<8x1xf32, #tpu.memory_space<vmem>>, vector<8x1xf32>,
    } else {
    }
    return
  }
  func.func @transform_0(%arg0: i32, %arg1: i32) -> (i32, i32) {
    %c0_i32 = arith.constant 0 : i32
    %c0_i32_0 = arith.constant 0 : i32
    return %arg0, %c0_i32 : i32, i32
  }
  func.func @transform_1(%arg0: i32, %arg1: i32) -> (i32, i32) {
    %c0_i32 = arith.constant 0 : i32
    %c0_i32_0 = arith.constant 0 : i32
    return %c0_i32, %arg1 : i32, i32
  }
  func.func @transform_2(%arg0: i32, %arg1: i32) -> (i32, i32) {
    %c0_i32 = arith.constant 0 : i32
    %c0_i32_0 = arith.constant 0 : i32
    return %c0_i32, %arg1 : i32, i32
  }
  func.func @transform_3(%arg0: i32, %arg1: i32) -> (i32, i32) {
    %c0_i32 = arith.constant 0 : i32
    %c0_i32_0 = arith.constant 0 : i32
    return %arg0, %c0_i32 : i32, i32
  }
  func.func @transform_4(%arg0: i32, %arg1: i32) -> (i32, i32) {
    %c0_i32 = arith.constant 0 : i32
    %c0_i32_0 = arith.constant 0 : i32
    return %c0_i32, %arg1 : i32, i32
  }
  func.func @transform_5(%arg0: i32, %arg1: i32) -> (i32, i32) {
    %c0_i32 = arith.constant 0 : i32
    %c0_i32_0 = arith.constant 0 : i32
    return %arg0, %c0_i32 : i32, i32
  }
}

</mosaic_0001>

<bundles_post_ra>
// kernel: tpu_custom_call.1
= control target key start
LH: loop header
LB: loop body
LE: loop exit
PB: predicated region body
PF: predicated region fallthrough
CT: control target
= control target key end

     0   :  { %10 = vsyncpa [#allocation7], 0  ;;  %s314_s18 = smov [#allocation6]   ;;  %s399_s0 = inlined_call_operand.vmem [shape: s32[8,1], index: 0, kind: input, shape index: {}]   ;;  %s400_s1 = inlined_call_operand.vmem [shape: s32[1,128], index: 1, kind: input, shape index: {}]   ;;  %s401_s2 = inlined_call_operand.vmem [shape: f32[1,128], index: 2, kind: input, shape index: {}]   ;;  %s402_s3 = inlined_call_operand.vmem [shape: f32[8,128], index: 3, kind: input, shape index: {}]   ;;  %s403_s4 = inlined_call_operand.hbm [shape: f32[128,128], index: 4, kind: input, shape index: {}]   ;;  %s404_s5 = inlined_call_operand.vmem [shape: f32[8,1], index: 5, kind: output, shape index: {}]  }
   0x1   :  { %s24_s19 = sshll.u32 %s314_s18, 4  ;;  %s25_s19 = int_to_ptr.vmem [resolvable:$true] %s24_s19 }
   0x2   :  { %s300_s20 = scalar_lea.vmem %s25_s19, 2048  ;;  %p305_p1 = scmp.lt.s32.totalorder %s25_s19, %s25_s19 }
   0x3   :  { %p301_p0 = scmp.ne.s32.totalorder %s25_s19, %s300_s20  ;;  %p306_p2 = scmp.lt.s32.totalorder %s300_s20, %s300_s20 }
   0x5   :  { %p307_p3 = por %p306_p2, %p305_p1 }
   0x7   :  { %p308_p4 = pnand %p307_p3, %p301_p0 }
   0x9   :  { %311 = shalt.err (!%p308_p4)
}
   0xa   :  { %s315_s21 = smov 128   ;;  %s316_s22 = smov 8  }
   0xb   :  { %30 = dma.hbm_to_vmem [thread:$0]  %s403_s4, 2048, %s25_s19, [#allocation7], %s315_s21, %s315_s21, %s316_s22  }
   0xc   :  { %312 = dma.done.wait [#allocation7], 2048  }
   0xd   :  { %313 = vsyncadd [#allocation7], 4294965248  ;;  %v317_v0 = vmov 0.0   ;;  %vm318_vm0 = vmmov 0   ;;  %v319_v1 = vmov 0   ;;  %v59_v2 = vld [vmem:[#allocation6 + $0x78] sm:$0xff]  ;;  %v139_v33 = vlaneseq }
   0xe   :  { %240 = vmatprep.subr.mxu0 %v317_v0  ;;  %272 = vmatprep.mubr.msk.f32.mxu0 %vm318_vm0, %v317_v0  ;;  %v58_v3 = vld [vmem:[#allocation6 + $0x70] sm:$0xff]  ;;  %v57_v4 = vld [vmem:[#allocation6 + $0x68] sm:$0xff]  ;;  %v56_v5 = vld [vmem:[#allocation6 + $0x60] sm:$0xff]  ;;  %vm38_vm1 = vcmask 7168   ;;  %v320_v20 = vmov -inf  }
   0xf   :  { %283 = vset.pattern.permute.xlu1 %v319_v1  ;;  %282 = vset.pattern.permute.xlu0 %v319_v1  ;;  %v150_v6 = vld [vmem:[%s399_s0] sm:$0xff]  ;;  %v54_v8 = vld [vmem:[#allocation6 + $0x50] sm:$0xff]  ;;  %v53_v9 = vld [vmem:[#allocation6 + $0x48] sm:$0xff]  ;;  %39 = vst.msk [vmem:[#allocation2] sm:$0xff] %vm38_vm1, %v320_v20  ;;  %v140_v34 = vshrl.u32 %v139_v33, 7  ;;  %v145_v35 = vand.u32 127, %v139_v33 }
  0x10   :  { %241 = vmatpush3.msra.mxu0 %v59_v2  ;;  %v55_v7 = vld [vmem:[#allocation6 + $0x58] sm:$0xff]  ;;  %153 = vperm.xlu1 %283, %v150_v6   ;;  %v52_v10 = vld [vmem:[#allocation6 + $0x40] sm:$0xff]  ;;  %v50_v12 = vld [vmem:[#allocation6 + $0x30] sm:$0xff]  ;;  %40 = vst.msk [vmem:[#allocation3] sm:$0xff] %vm38_vm1, %v317_v0 }
  0x11   :  { %242 = vmatprep.subr.mxu0 %v317_v0  ;;  %v51_v11 = vld [vmem:[#allocation6 + $0x38] sm:$0xff]  ;;  %v49_v13 = vld [vmem:[#allocation6 + $0x28] sm:$0xff]  ;;  %v48_v14 = vld [vmem:[#allocation6 + $0x20] sm:$0xff]  ;;  %41 = vst.msk [vmem:[#allocation4] sm:$0xff] %vm38_vm1, %v317_v0  ;;  %vm149_vm3 = vcmp.ne.s32.totalorder %v145_v35, %v140_v34 }
  0x12   :  { %243 = vmatpush3.msra.mxu0 %v58_v3  ;;  %v47_v15 = vld [vmem:[#allocation6 + $0x18] sm:$0xff]  ;;  %v46_v16 = vld [vmem:[#allocation6 + $0x10] sm:$0xff]  ;;  %v45_v17 = vld [vmem:[#allocation6 + $0x8] sm:$0xff]  ;;  %42 = vst.msk [vmem:[#allocation5] sm:$0xff] %vm38_vm1, %v317_v0 }
  0x13   :  { %244 = vmatprep.subr.mxu0 %v317_v0  ;;  %v44_v18 = vld [vmem:[#allocation6] sm:$0xff]  ;;  %v43_v19 = vld [vmem:[%s402_s3] sm:$0xff] }
  0x14   :  { %245 = vmatpush3.msra.mxu0 %v57_v4  ;;  %v221_v22 = vld [vmem:[%s401_s2] ss:$0 sm:$0xff] }
  0x15   :  { %246 = vmatprep.subr.mxu0 %v317_v0  ;;  %v222_v36 = vld [vmem:[%s400_s1] ss:$0 sm:$0xff] }
  0x16   :  { %247 = vmatpush3.msra.mxu0 %v56_v5  ;;  %v161_v26 = vld [vmem:[#allocation2] sm:$0xff] }
  0x17   :  { %248 = vmatprep.subr.mxu0 %v317_v0  ;;  %v177_v44 = vld [vmem:[#allocation3] sm:$0xff] }
  0x18   :  { %249 = vmatpush3.msra.mxu0 %v55_v7  ;;  %v185_v51 = vld [vmem:[#allocation4] sm:$0xff] }
  0x19   :  { %250 = vmatprep.subr.mxu0 %v317_v0  ;;  %v191_v48 = vld [vmem:[#allocation5] sm:$0xff] }
  0x1a   :  { %251 = vmatpush3.msra.mxu0 %v54_v8 }
  0x1b   :  { %252 = vmatprep.subr.mxu0 %v317_v0 }
  0x1c   :  { %253 = vmatpush3.msra.mxu0 %v53_v9 }
  0x1d   :  { %254 = vmatprep.subr.mxu0 %v317_v0 }
  0x1e   :  { %255 = vmatpush3.msra.mxu0 %v52_v10 }
  0x1f   :  { %256 = vmatprep.subr.mxu0 %v317_v0 }
  0x20   :  { %257 = vmatpush3.msra.mxu0 %v51_v11 }
  0x21   :  { %258 = vmatprep.subr.mxu0 %v317_v0 }
  0x22   :  { %259 = vmatpush3.msra.mxu0 %v50_v12 }
  0x23   :  { %260 = vmatprep.subr.mxu0 %v317_v0 }
  0x24   :  { %261 = vmatpush3.msra.mxu0 %v49_v13 }
  0x25   :  { %262 = vmatprep.subr.mxu0 %v317_v0 }
  0x26   :  { %263 = vmatpush3.msra.mxu0 %v48_v14 }
  0x27   :  { %264 = vmatprep.subr.mxu0 %v317_v0 }
  0x28   :  { %265 = vmatpush3.msra.mxu0 %v47_v15 }
  0x29   :  { %266 = vmatprep.subr.mxu0 %v317_v0 }
  0x2a   :  { %267 = vmatpush3.msra.mxu0 %v46_v16 }
  0x2b   :  { %268 = vmatprep.subr.mxu0 %v317_v0 }
  0x2c   :  { %269 = vmatpush3.msra.mxu0 %v45_v17 }
  0x2d   :  { %270 = vmatprep.subr.mxu0 %v317_v0 }
  0x2e   :  { %271 = vmatpush3.msra.mxu0 %v44_v18 }
  0x2f   :  { %273 = vmatmul.mubr.f32.vlgmr.msra.gmra.mxu0 %v43_v19 }
  0x8b   :  { %v154_v37 = vpop.permute.xlu1 %153 }
  0x8c   :  { %vm159_vm2 = vcmp.eq.s32.totalorder %v154_v37, %v222_v36 }
  0x8d   :  { %vm160_vm4 = vmand %vm159_vm2, %vm149_vm3 }
  0x8e   :  { %v192_v40 = vsel %vm160_vm4, 1.0, %v317_v0 }
  0xef   :  { %v126_v21 = vpop.f32.mrf.mxu0 }
  0xf0   :  { %v130_v23 = vmul.f32 14.285714, %v126_v21 }
  0xf1   :  { %v274_v24 = vpop.f32.mrf.mxu0 }
  0xf2   :  { %v138_v25 = vadd.f32 %v221_v22, %v130_v23 }
  0xf4   :  { %162 = vmax.xlane.f32.xlu0 %v138_v25  ;;  %v186_v41 = vsel %vm160_vm4, %v138_v25, 0.0 }
 0x17d   :  { %v163_v27 = vpop.xlane.xlu0 %162 }
 0x17e   :  { %v164_v28 = vmax.f32 %v161_v26, %v163_v27 }
 0x180   :  { %v165_v29 = vsub.f32 %v161_v26, %v164_v28  ;;  %184 = vst.msk [vmem:[#allocation2] sm:$0xff] %vm38_vm1, %v164_v28  ;;  %170 = vperm.xlu0 %282, %v164_v28  }
 0x182   :  { %v166_v42 = vmul.f32 1.442695, %v165_v29 }
 0x187   :  { %v200_v59 = vld [vmem:[#allocation2] sm:$0xff] }
 0x1fb   :  { %v171_v30 = vpop.permute.xlu0 %170 }
 0x1fc   :  { %v173_v31 = vsub.f32 %v138_v25, %v171_v30 }
 0x1fe   :  { %v174_v32 = vmul.f32 1.442695, %v173_v31 }
 0x200   :  { %284 = vpow2.f32 %v174_v32 }
 0x201   :  { %286 = vpow2.f32 %v166_v42 }
 0x20d   :  { %v285_v38 = vpop.eup %284 }
 0x20e   :  { %v176_v39 = vsel %vm149_vm3, %v285_v38, 0.0  ;;  %v287_v43 = vpop.eup %286 }
 0x20f   :  { %179 = vadd.xlane.f32.xlu1 %v176_v39  ;;  %v178_v45 = vmul.f32 %v287_v43, %v177_v44 }
 0x213   :  { %193 = vadd.xlane.f32.xlu1 %v192_v40 }
 0x217   :  { %187 = vadd.xlane.f32.xlu1 %v186_v41 }
 0x298   :  { %v180_v46 = vpop.xlane.xlu1 %179 }
 0x299   :  { %v181_v47 = vadd.f32 %v180_v46, %v178_v45 }
 0x29b   :  { %183 = vst.msk [vmem:[#allocation3] sm:$0xff] %vm38_vm1, %v181_v47 }
 0x29c   :  { %v194_v49 = vpop.xlane.xlu1 %193 }
 0x29d   :  { %v195_v50 = vadd.f32 %v194_v49, %v191_v48 }
 0x29f   :  { %196 = vst.msk [vmem:[#allocation5] sm:$0xff] %vm38_vm1, %v195_v50 }
 0x2a0   :  { %v188_v52 = vpop.xlane.xlu1 %187 }
 0x2a1   :  { %v189_v53 = vadd.f32 %v188_v52, %v185_v51 }
 0x2a2   :  { %v201_v54 = vld [vmem:[#allocation3] sm:$0xff] }
 0x2a3   :  { %288 = vlog2.f32 %v201_v54  ;;  %190 = vst.msk [vmem:[#allocation4] sm:$0xff] %vm38_vm1, %v189_v53 }
 0x2a6   :  { %v205_v55 = vld [vmem:[#allocation5] sm:$0xff] }
 0x2a7   :  { %v209_v56 = vadd.f32 1e-10, %v205_v55 }
 0x2a9   :  { %290 = vrcp.f32 %v209_v56 }
 0x2aa   :  { %v206_v63 = vld [vmem:[#allocation4] sm:$0xff] }
 0x2b0   :  { %v289_v57 = vpop.eup %288 }
 0x2b1   :  { %v203_v58 = vmul.f32 0.6931472, %v289_v57 }
 0x2b3   :  { %v204_v60 = vadd.f32 %v203_v58, %v200_v59 }
 0x2b5   :  { %v207_v61 = vmul.f32 %v205_v55, %v204_v60 }
 0x2b6   :  { %v291_v62 = vpop.eup %290 }
 0x2b7   :  { %v208_v0 = vsub.f32 %v206_v63, %v207_v61 }
 0x2b9   :  { %v211_v1 = vmul.f32 %v291_v62, %v208_v0 }
 0x2bb   :  { %v213_v2 = vmul.f32 -1.0, %v211_v1 }
 0x2bd   :  { %215 = vst.msk [vmem:[%s404_s5] sm:$0xff] %vm38_vm1, %v213_v2 }
 0x2be   :  { %220 = vsyncpa [#allocation7], 1 }

</bundles_post_ra>
